<compile_context>
chip_gen: v6e
topology: v6e:2x2x1
jax: 0.10.0
libtpu: 0.0.40
codegen_flags: <defaults>
</compile_context>

<pallas_src>
import jax
import jax.numpy as jnp
from jax.experimental import pallas as pl
from jax.experimental.pallas import tpu as pltpu


# ---------------------------------------------------------------------------
# Kernel
# ---------------------------------------------------------------------------
def _valuenet_kernel(x_ref, w1_ref, b1_ref, w2_ref, b2_ref, w3_ref, b3_ref, o_ref):
    # x arrives as f32; cast to bf16 in-register so the MXU runs at bf16 rate
    # (no wrapper-side astype -> no extra HBM pass over x).
    x = x_ref[...].astype(jnp.bfloat16)

    # Layer 1: (tb, Dp) bf16 @ (Dp, Hp) bf16 -> f32 accumulate on the MXU.
    h1 = jnp.dot(x, w1_ref[...], preferred_element_type=jnp.float32)
    h1 = jnp.maximum(h1 + b1_ref[...], 0.0)

    # Layer 2: cast activations back to bf16 so the MXU stays at bf16 rate.
    h2 = jnp.dot(h1.astype(jnp.bfloat16), w2_ref[...],
                 preferred_element_type=jnp.float32)
    h2 = jnp.maximum(h2 + b2_ref[...], 0.0)

    # Layer 3: an (H, 1) matmul wastes the MXU; do it as a VPU multiply plus an
    # XLU cross-lane reduction.  w3 is a (1, Hp) row (zero-padded), b3 a scalar
    # in SMEM.  Output kept as a (tb, 1) column (a lane-dense (1, tb) row would
    # need an extra XLU transpose for a modest win; skipped for robustness).
    v = jnp.sum(h2 * w3_ref[...], axis=-1, keepdims=True)
    o_ref[...] = (v + b3_ref[0, 0]).astype(o_ref.dtype)


# ---------------------------------------------------------------------------
# Sizing helpers
# ---------------------------------------------------------------------------
def _round_up(x, m):
    return ((x + m - 1) // m) * m


def _tpu_vmem_budget():
    """Usable VMEM budget in bytes: ~80% of physical capacity (leaves headroom
    for Mosaic internal scratch).  v5e/v6e (128 MiB) -> ~102 MiB, v7x (64 MiB)
    -> ~51 MiB.  Falls back to the v7x-safe number if the query fails."""
    cap = 64 * 2**20
    try:
        info = pltpu.get_tpu_info()
        cap = int(getattr(info, "vmem_capacity_bytes", cap)) or cap
    except Exception:
        pass
    return int(cap * 0.8)


def _pick_batch_tile(batch, d_pad, h_pad, vmem_budget, weight_bytes,
                     max_tile=2048):
    """Largest 8-aligned batch tile whose streaming buffers fit in the VMEM
    left over after the single-buffered resident weights.  Prefers an exact
    divisor of `batch` (no row padding); otherwise the caller pads the batch.
    No 512-row cap: on single-TC v5e/v6e, fewer grid steps = less fixed
    per-step overhead; large batches still get >=2 steps for DMA overlap and
    v7x dual-TC sharding."""
    # Per-row VMEM: double-buffered f32 x tile (+ bf16 copy), f32 h1/h2
    # intermediates (+ bf16 copy), double-buffered f32 output column.
    per_row = 2 * d_pad * 4 + d_pad * 2 + 3 * h_pad * 4 + h_pad * 2 + 2 * 4
    avail = vmem_budget - weight_bytes - (2 << 20)
    tb_cap = max(8, min(max_tile, (avail // per_row) // 8 * 8))
    tb_cap = min(tb_cap, _round_up(batch, 8))

    best = 0
    for t in range(8, tb_cap + 1, 8):
        if batch % t == 0:
            best = t
    if best >= max(8, tb_cap // 4):
        return best
    return tb_cap


# ---------------------------------------------------------------------------
# Parameter preparation (one-time: pad + cast outside the forward call)
# ---------------------------------------------------------------------------
def prepare_value_net_params(params, *, lane=128):
    """Pad D/H up to multiples of `lane` (128; 256 can be used for H on
    v6e/v7x) with zeros and pre-cast the matmul weights to bf16 ONCE, so the
    forward pass does no per-call casting / weight re-streaming.  Zero-padded
    columns are numerically inert through ReLU and the w3 reduction."""
    D, H = params["w1"].shape
    d_pad = _round_up(D, lane)
    h_pad = _round_up(H, lane)

    w1 = jnp.pad(params["w1"].astype(jnp.bfloat16),
                 ((0, d_pad - D), (0, h_pad - H)))
    w2 = jnp.pad(params["w2"].astype(jnp.bfloat16),
                 ((0, h_pad - H), (0, h_pad - H)))
    b1 = jnp.pad(params["b1"].astype(jnp.float32), ((0, 0), (0, h_pad - H)))
    b2 = jnp.pad(params["b2"].astype(jnp.float32), ((0, 0), (0, h_pad - H)))
    w3 = jnp.pad(params["w3"].reshape(1, H).astype(jnp.float32),
                 ((0, 0), (0, h_pad - H)))
    b3 = params["b3"].reshape(1, 1).astype(jnp.float32)

    return {"w1": w1, "b1": b1, "w2": w2, "b2": b2, "w3": w3, "b3": b3,
            "input_dim": D, "hidden_dim": H}


# ---------------------------------------------------------------------------
# Forward pass
# ---------------------------------------------------------------------------
def value_net_forward(x, prepared, *, batch_tile=None):
    """ValueNet forward pass in one fused Pallas kernel.

    x:        (B, input_dim) float32
    prepared: output of prepare_value_net_params (bf16 weights, padded dims)
    returns:  (B, 1) float32
    """
    w1, b1 = prepared["w1"], prepared["b1"]
    w2, b2 = prepared["w2"], prepared["b2"]
    w3, b3 = prepared["w3"], prepared["b3"]
    d_pad, h_pad = w1.shape

    B, D = x.shape
    if D > d_pad:
        raise ValueError(f"x feature dim ({D}) exceeds prepared width ({d_pad})")
    if x.dtype != jnp.float32:
        x = x.astype(jnp.float32)
    if D != d_pad:
        # Zero feature-padding is numerically inert (padded w1 rows are zero).
        # NOTE: in a hot loop, feed pre-padded x to avoid this extra HBM pass.
        x = jnp.pad(x, ((0, 0), (0, d_pad - D)))

    vmem_budget = _tpu_vmem_budget()
    weight_bytes = ((w1.size + w2.size) * 2            # bf16, single-buffered
                    + (b1.size + b2.size + w3.size) * 4)
    if weight_bytes > vmem_budget:
        # Fallback for H >~ 4K on v7x: add an "arbitrary" grid axis tiling the
        # hidden dim (N of matmul-1 / K of matmul-2) instead of resident weights.
        raise ValueError(
            f"resident weights ({weight_bytes} B) exceed the VMEM budget "
            f"({vmem_budget} B); tile the hidden dimension for H this large.")

    tb = batch_tile if batch_tile is not None else _pick_batch_tile(
        B, d_pad, h_pad, vmem_budget, weight_bytes)
    if tb % 8 != 0:
        raise ValueError(f"batch_tile ({tb}) must be a multiple of 8 (sublane)")

    n_steps = -(-B // tb)
    b_pad = n_steps * tb
    if b_pad != B:
        x = jnp.pad(x, ((0, b_pad - B), (0, 0)))

    # VMEM limit from the actual residency (single-buffered weights), with 2x
    # headroom, capped by the generation-aware budget.
    resident = (weight_bytes
                + 2 * tb * d_pad * 4        # x tile (f32, double-buffered)
                + 2 * tb * 4                # output column (f32, double-buffered)
                + 3 * tb * h_pad * 4)       # live f32/bf16 intermediates
    vmem_limit = int(min(vmem_budget, max(2 * resident, 16 * 2**20)))

    # Weights / biases never change across the grid -> single buffer.
    const = pl.Buffered(1)
    # If profiling shows the x DMA exposed (tiny weights, huge batch), bump the
    # x spec to pipeline_mode=pl.Buffered(3) and sweep.

    out = pl.pallas_call(
        _valuenet_kernel,
        out_shape=jax.ShapeDtypeStruct((b_pad, 1), jnp.float32),
        grid_spec=pltpu.PrefetchScalarGridSpec(
            num_scalar_prefetch=0,
            grid=(n_steps,),
            in_specs=[
                pl.BlockSpec((tb, d_pad), lambda i: (i, 0)),           # x tile (f32)
                pl.BlockSpec((d_pad, h_pad), lambda i: (0, 0),
                             pipeline_mode=const),                     # w1 (bf16)
                pl.BlockSpec((1, h_pad), lambda i: (0, 0),
                             pipeline_mode=const),                     # b1
                pl.BlockSpec((h_pad, h_pad), lambda i: (0, 0),
                             pipeline_mode=const),                     # w2 (bf16)
                pl.BlockSpec((1, h_pad), lambda i: (0, 0),
                             pipeline_mode=const),                     # b2
                pl.BlockSpec((1, h_pad), lambda i: (0, 0),
                             pipeline_mode=const),                     # w3 row
                pl.BlockSpec(memory_space=pltpu.MemorySpace.SMEM),     # b3 scalar
            ],
            out_specs=pl.BlockSpec((tb, 1), lambda i: (i, 0)),
        ),
        compiler_params=pltpu.CompilerParams(
            dimension_semantics=("parallel",),
            vmem_limit_bytes=vmem_limit,
        ),
    )(x, w1, b1, w2, b2, w3, b3)

    return out[:B] if b_pad != B else out


# ---------------------------------------------------------------------------
# Init + reference
# ---------------------------------------------------------------------------
def init_value_net_params(key, input_dim, hidden_dim):
    """Deterministic init mirroring PyTorch nn.Linear default
    U(-1/sqrt(fan_in), +1/sqrt(fan_in)).  Weights stored as (in, out);
    w3 as the (1, H) row; biases (1, H) / (1, 1)."""
    k1, k2, k3, k4, k5, k6 = jax.random.split(key, 6)

    def uniform(k, shape, fan_in):
        bound = 1.0 / jnp.sqrt(fan_in)
        return jax.random.uniform(k, shape, jnp.float32, -bound, bound)

    return {
        "w1": uniform(k1, (input_dim, hidden_dim), input_dim),
        "b1": uniform(k2, (1, hidden_dim), input_dim),
        "w2": uniform(k3, (hidden_dim, hidden_dim), hidden_dim),
        "b2": uniform(k4, (1, hidden_dim), hidden_dim),
        "w3": uniform(k5, (1, hidden_dim), hidden_dim),
        "b3": uniform(k6, (1, 1), hidden_dim),
    }


def value_net_ref(x, params):
    """Pure-JAX reference mirroring the kernel's precision (bf16 matmul inputs,
    f32 accumulation).  The true f32 PyTorch module differs only by bf16
    rounding of the matmul inputs."""
    xb = x.astype(jnp.bfloat16)
    w1 = params["w1"].astype(jnp.bfloat16)
    w2 = params["w2"].astype(jnp.bfloat16)
    h1 = jnp.maximum(
        jnp.dot(xb, w1, preferred_element_type=jnp.float32) + params["b1"], 0.0)
    h2 = jnp.maximum(
        jnp.dot(h1.astype(jnp.bfloat16), w2, preferred_element_type=jnp.float32)
        + params["b2"], 0.0)
    return jnp.sum(h2 * params["w3"], axis=-1, keepdims=True) + params["b3"]


# ---------------------------------------------------------------------------
if __name__ == "__main__":
    key = jax.random.PRNGKey(0)
    kx, kp = jax.random.split(key)

    # Small demo shapes consistent with the module; D/H are padded to 128
    # inside prepare_value_net_params.
    batch, input_dim, hidden_dim = 64, 16, 32
    x = jax.random.normal(kx, (batch, input_dim), jnp.float32)
    params = init_value_net_params(kp, input_dim, hidden_dim)
    prepared = prepare_value_net_params(params)   # pad + bf16-cast ONCE

    out = jax.block_until_ready(value_net_forward(x, prepared))
    ref = jax.block_until_ready(value_net_ref(x, params))

    assert out.shape == (batch, 1), out.shape
    err = float(jnp.max(jnp.abs(out - ref)))
    assert jnp.allclose(out, ref, atol=2e-3, rtol=2e-3), err

    print("KERNEL_OK")
</pallas_src>

<mosaic_0001>
module attributes {stable_mosaic.version = 11 : i64} {
  func.func @_valuenet_kernel(%arg0: i32, %arg1: memref<64x128xf32, #tpu.memory_space<vmem>>, %arg2: memref<128x128xbf16, #tpu.memory_space<vmem>>, %arg3: memref<1x128xf32, #tpu.memory_space<vmem>>, %arg4: memref<128x128xbf16, #tpu.memory_space<vmem>>, %arg5: memref<1x128xf32, #tpu.memory_space<vmem>>, %arg6: memref<1x128xf32, #tpu.memory_space<vmem>>, %arg7: memref<1x1xf32, #tpu.memory_space<smem>>, %arg8: memref<64x1xf32, #tpu.memory_space<vmem>>) attributes {dimension_semantics = [#tpu.dimension_semantics<parallel>], iteration_bounds = array<i64: 1>, scalar_prefetch = 0 : i64, scratch_operands = 0 : i64, tpu.core_type = #tpu.core_type<tc>, window_params = [{transform_indices = @transform_0, window_bounds = array<i64: 64, 128>}, {pipeline_mode = #tpu.pipeline_mode<synchronous>, transform_indices = @transform_1, window_bounds = array<i64: 128, 128>}, {pipeline_mode = #tpu.pipeline_mode<synchronous>, transform_indices = @transform_2, window_bounds = array<i64: 1, 128>}, {pipeline_mode = #tpu.pipeline_mode<synchronous>, transform_indices = @transform_3, window_bounds = array<i64: 128, 128>}, {pipeline_mode = #tpu.pipeline_mode<synchronous>, transform_indices = @transform_4, window_bounds = array<i64: 1, 128>}, {pipeline_mode = #tpu.pipeline_mode<synchronous>, transform_indices = @transform_5, window_bounds = array<i64: 1, 128>}, {transform_indices = @transform_6, window_bounds = array<i64: 1, 1>}, {transform_indices = @transform_7, window_bounds = array<i64: 64, 1>}]} {
    %c0 = arith.constant 0 : index
    %c0_0 = arith.constant 0 : index
    %0 = vector.load %arg1[%c0, %c0_0] : memref<64x128xf32, #tpu.memory_space<vmem>>, vector<64x128xf32>
    %1 = arith.truncf %0 : vector<64x128xf32> to vector<64x128xbf16>
    %c0_1 = arith.constant 0 : index
    %c0_2 = arith.constant 0 : index
    %2 = vector.load %arg2[%c0_1, %c0_2] : memref<128x128xbf16, #tpu.memory_space<vmem>>, vector<128x128xbf16>
    %cst = arith.constant dense<0.000000e+00> : vector<64x128xf32>
    %3 = tpu.matmul %1, %2, %cst {dimension_numbers = #tpu.dot_dimension_numbers<[1], [0], [0], [1], [0, 0, 1, 1], [], []>} : vector<64x128xbf16>, vector<128x128xbf16>, vector<64x128xf32> -> vector<64x128xf32>
    %c0_3 = arith.constant 0 : index
    %c0_4 = arith.constant 0 : index
    %4 = vector.load %arg3[%c0_3, %c0_4] : memref<1x128xf32, #tpu.memory_space<vmem>>, vector<1x128xf32>
    %5 = vector.broadcast %4 : vector<1x128xf32> to vector<64x128xf32>
    %6 = arith.addf %3, %5 : vector<64x128xf32>
    %cst_5 = arith.constant 0.000000e+00 : f32
    %7 = vector.broadcast %cst_5 : f32 to vector<64x128xf32>
    %8 = arith.maximumf %6, %7 : vector<64x128xf32>
    %9 = arith.truncf %8 : vector<64x128xf32> to vector<64x128xbf16>
    %c0_6 = arith.constant 0 : index
    %c0_7 = arith.constant 0 : index
    %10 = vector.load %arg4[%c0_6, %c0_7] : memref<128x128xbf16, #tpu.memory_space<vmem>>, vector<128x128xbf16>
    %cst_8 = arith.constant dense<0.000000e+00> : vector<64x128xf32>
    %11 = tpu.matmul %9, %10, %cst_8 {dimension_numbers = #tpu.dot_dimension_numbers<[1], [0], [0], [1], [0, 0, 1, 1], [], []>} : vector<64x128xbf16>, vector<128x128xbf16>, vector<64x128xf32> -> vector<64x128xf32>
    %c0_9 = arith.constant 0 : index
    %c0_10 = arith.constant 0 : index
    %12 = vector.load %arg5[%c0_9, %c0_10] : memref<1x128xf32, #tpu.memory_space<vmem>>, vector<1x128xf32>
    %13 = vector.broadcast %12 : vector<1x128xf32> to vector<64x128xf32>
    %14 = arith.addf %11, %13 : vector<64x128xf32>
    %cst_11 = arith.constant 0.000000e+00 : f32
    %15 = vector.broadcast %cst_11 : f32 to vector<64x128xf32>
    %16 = arith.maximumf %14, %15 : vector<64x128xf32>
    %c0_12 = arith.constant 0 : index
    %c0_13 = arith.constant 0 : index
    %17 = vector.load %arg6[%c0_12, %c0_13] : memref<1x128xf32, #tpu.memory_space<vmem>>, vector<1x128xf32>
    %18 = vector.broadcast %17 : vector<1x128xf32> to vector<64x128xf32>
    %19 = arith.mulf %16, %18 : vector<64x128xf32>
    %cst_14 = arith.constant dense<0.000000e+00> : vector<64xf32>
    %20 = vector.multi_reduction <add>, %19, %cst_14 [1] : vector<64x128xf32> to vector<64xf32>
    %21 = vector.shape_cast %20 : vector<64xf32> to vector<64x1xf32>
    %c0_15 = arith.constant 0 : index
    %c0_16 = arith.constant 0 : index
    %22 = memref.load %arg7[%c0_15, %c0_16] : memref<1x1xf32, #tpu.memory_space<smem>>
    %23 = vector.broadcast %22 : f32 to vector<64x1xf32>
    %24 = arith.addf %21, %23 : vector<64x1xf32>
    %c0_17 = arith.constant 0 : index
    %c0_18 = arith.constant 0 : index
    %25 = vector.load %arg8[%c0_17, %c0_18] : memref<64x1xf32, #tpu.memory_space<vmem>>, vector<64x1xf32>
    tpu.vector_store %arg8[%c0_17, %c0_18], %24 {strides = array<i32>} : memref<64x1xf32, #tpu.memory_space<vmem>>, vector<64x1xf32>,
    return
  }
  func.func @transform_0(%arg0: i32) -> (i32, i32) {
    %c0_i32 = arith.constant 0 : i32
    %c0_i32_0 = arith.constant 0 : i32
    return %arg0, %c0_i32 : i32, i32
  }
  func.func @transform_1(%arg0: i32) -> (i32, i32) {
    %c0_i32 = arith.constant 0 : i32
    %c0_i32_0 = arith.constant 0 : i32
    %c0_i32_1 = arith.constant 0 : i32
    return %c0_i32, %c0_i32_0 : i32, i32
  }
  func.func @transform_2(%arg0: i32) -> (i32, i32) {
    %c0_i32 = arith.constant 0 : i32
    %c0_i32_0 = arith.constant 0 : i32
    %c0_i32_1 = arith.constant 0 : i32
    return %c0_i32, %c0_i32_0 : i32, i32
  }
  func.func @transform_3(%arg0: i32) -> (i32, i32) {
    %c0_i32 = arith.constant 0 : i32
    %c0_i32_0 = arith.constant 0 : i32
    %c0_i32_1 = arith.constant 0 : i32
    return %c0_i32, %c0_i32_0 : i32, i32
  }
  func.func @transform_4(%arg0: i32) -> (i32, i32) {
    %c0_i32 = arith.constant 0 : i32
    %c0_i32_0 = arith.constant 0 : i32
    %c0_i32_1 = arith.constant 0 : i32
    return %c0_i32, %c0_i32_0 : i32, i32
  }
  func.func @transform_5(%arg0: i32) -> (i32, i32) {
    %c0_i32 = arith.constant 0 : i32
    %c0_i32_0 = arith.constant 0 : i32
    %c0_i32_1 = arith.constant 0 : i32
    return %c0_i32, %c0_i32_0 : i32, i32
  }
  func.func @transform_6(%arg0: i32) -> (i32, i32) {
    %c0_i32 = arith.constant 0 : i32
    %c0_i32_0 = arith.constant 0 : i32
    %c0_i32_1 = arith.constant 0 : i32
    return %c0_i32, %c0_i32_0 : i32, i32
  }
  func.func @transform_7(%arg0: i32) -> (i32, i32) {
    %c0_i32 = arith.constant 0 : i32
    %c0_i32_0 = arith.constant 0 : i32
    return %arg0, %c0_i32 : i32, i32
  }
}

</mosaic_0001>

<bundles_post_ra>
// kernel: tpu_custom_call.1
= control target key start
LH: loop header
LB: loop body
LE: loop exit
PB: predicated region body
PF: predicated region fallthrough
CT: control target
= control target key end

     0   :  { %13 = vsyncpa [#allocation4], 0  ;;  %s707_s0 = inlined_call_operand.hbm [shape: f32[64,128], index: 0, kind: input, shape index: {}]   ;;  %s708_s1 = inlined_call_operand.hbm [shape: bf16[128,128], index: 1, kind: input, shape index: {}]   ;;  %s709_s2 = inlined_call_operand.vmem [shape: f32[1,128], index: 2, kind: input, shape index: {}]   ;;  %s710_s3 = inlined_call_operand.hbm [shape: bf16[128,128], index: 3, kind: input, shape index: {}]   ;;  %s711_s4 = inlined_call_operand.vmem [shape: f32[1,128], index: 4, kind: input, shape index: {}]   ;;  %s712_s5 = inlined_call_operand.vmem [shape: f32[1,128], index: 5, kind: input, shape index: {}]   ;;  %s713_s6 = inlined_call_operand.<no memory space> [shape: f32[1,1], index: 6, kind: input, shape index: {}]   ;;  %s714_s7 = inlined_call_operand.vmem [shape: f32[64,1], index: 7, kind: output, shape index: {}]  }
   0x1   :  { %14 = vsyncpa [#allocation6], 0  ;;  %s607_s24 = smov [#allocation5]  }
   0x2   :  { %s32_s25 = sshll.u32 %s607_s24, 4  ;;  %s33_s25 = int_to_ptr.vmem [resolvable:$true] %s32_s25 }
   0x3   :  { %s551_s26 = scalar_lea.vmem %s33_s25, 1024  ;;  %p556_p1 = scmp.lt.s32.totalorder %s33_s25, %s33_s25 }
   0x4   :  { %p552_p0 = scmp.ne.s32.totalorder %s33_s25, %s551_s26  ;;  %p557_p2 = scmp.lt.s32.totalorder %s551_s26, %s551_s26 }
   0x6   :  { %p558_p3 = por %p557_p2, %p556_p1 }
   0x8   :  { %p559_p4 = pnand %p558_p3, %p552_p0 }
   0xa   :  { %562 = shalt.err (!%p559_p4)
}
   0xb   :  { %s608_s27 = smov 64   ;;  %s609_s28 = smov 4  }
   0xc   :  { %38 = dma.hbm_to_vmem [thread:$0]  %s708_s1, 1024, %s33_s25, [#allocation6], %s608_s27, %s608_s27, %s609_s28  }
   0xd   :  { %s610_s8 = smov [#allocation3]  }
   0xe   :  { %s20_s9 = sshll.u32 %s610_s8, 4  ;;  %s21_s9 = int_to_ptr.vmem [resolvable:$true] %s20_s9 }
   0xf   :  { %s571_s10 = scalar_lea.vmem %s21_s9, 1024  ;;  %p576_p6 = scmp.lt.s32.totalorder %s21_s9, %s21_s9 }
  0x10   :  { %p572_p5 = scmp.ne.s32.totalorder %s21_s9, %s571_s10  ;;  %p577_p7 = scmp.lt.s32.totalorder %s571_s10, %s571_s10 }
  0x12   :  { %p578_p8 = por %p577_p7, %p576_p6 }
  0x14   :  { %p579_p9 = pnand %p578_p8, %p572_p5 }
  0x16   :  { %582 = shalt.err (!%p579_p9)
}
  0x17   :  { %s611_s11 = smov 128   ;;  %s612_s12 = smov 8  }
  0x18   :  { %26 = dma.hbm_to_vmem [thread:$0]  %s707_s0, 1024, %s21_s9, [#allocation4], %s611_s11, %s611_s11, %s612_s12  }
  0x19   :  { %s613_s15 = smov [#allocation7]  }
  0x1a   :  { %s46_s16 = sshll.u32 %s613_s15, 4  ;;  %s47_s16 = int_to_ptr.vmem [resolvable:$true] %s46_s16 }
  0x1b   :  { %s591_s1 = scalar_lea.vmem %s47_s16, 1024  ;;  %p596_p11 = scmp.lt.s32.totalorder %s47_s16, %s47_s16 }
  0x1c   :  { %p592_p10 = scmp.ne.s32.totalorder %s47_s16, %s591_s1  ;;  %p597_p12 = scmp.lt.s32.totalorder %s591_s1, %s591_s1 }
  0x1e   :  { %p598_p13 = por %p597_p12, %p596_p11 }
  0x20   :  { %p599_p0 = pnand %p598_p13, %p592_p10 }
  0x22   :  { %602 = shalt.err (!%p599_p0)
}
  0x23   :  { %52 = dma.hbm_to_vmem [thread:$0]  %s710_s3, 1024, %s47_s16, [#allocation6], %s608_s27, %s608_s27, %s609_s28  }
  0x24   :  { %603 = dma.done.wait [#allocation4], 1024  }
  0x25   :  { %604 = vsyncadd [#allocation4], 4294966272 }
  0x26   :  { %605 = dma.done.wait [#allocation6], 2048  }
  0x27   :  { %606 = vsyncadd [#allocation6], 4294965248  ;;  %v527_v0 = vld [vmem:[#allocation5 + $0x38] sm:$0xff]   ;;  %v528_v1 = vld [vmem:[#allocation5 + $0x30] sm:$0xff]   ;;  %vm414_vm0 = vcmask 7168  }
  0x28   :  { %472 = vmatprep.subr.bf16.mxu0 %v527_v0  ;;  %v529_v2 = vld [vmem:[#allocation5 + $0x28] sm:$0xff]   ;;  %v530_v3 = vld [vmem:[#allocation5 + $0x20] sm:$0xff]   ;;  %v531_v7 = vld [vmem:[#allocation5 + $0x18] sm:$0xff]  }
  0x29   :  { %473 = vmatpush3.bf16.msra.mxu0 %v527_v0  ;;  %v69_v4 = vld [vmem:[#allocation3] sm:$0xff]  ;;  %v70_v5 = vld [vmem:[#allocation3 + $0x8] sm:$0xff]  ;;  %v535_v8 = vld [vmem:[#allocation7 + $0x38] sm:$0xff]  }
  0x2a   :  { %474 = vmatprep.subr.bf16.mxu0 %v528_v1  ;;  %v77_v6 = vpack.c.bf16 %v70_v5, %v69_v4  ;;  %v536_v9 = vld [vmem:[#allocation7 + $0x30] sm:$0xff]   ;;  %496 = vmatprep.subr.bf16.mxu1 %v535_v8  ;;  %v537_v11 = vld [vmem:[#allocation7 + $0x28] sm:$0xff]   ;;  %v538_v12 = vld [vmem:[#allocation7 + $0x20] sm:$0xff]  }
  0x2b   :  { %v532_v10 = vld [vmem:[#allocation5 + $0x10] sm:$0xff]   ;;  %497 = vmatpush3.bf16.msra.mxu1 %v535_v8  ;;  %v533_v13 = vld [vmem:[#allocation5 + $0x8] sm:$0xff]   ;;  %v539_v14 = vld [vmem:[#allocation7 + $0x18] sm:$0xff]  }
  0x2c   :  { %488 = vmatprep.mubr.bf16.mxu0 %v77_v6  ;;  %498 = vmatprep.subr.bf16.mxu1 %v536_v9  ;;  %v534_v15 = vld [vmem:[#allocation5] sm:$0xff]   ;;  %v71_v16 = vld [vmem:[#allocation3 + $0x10] sm:$0xff]  ;;  %v72_v17 = vld [vmem:[#allocation3 + $0x18] sm:$0xff] }
  0x2d   :  { %475 = vmatpush3.bf16.msra.mxu0 %v528_v1  ;;  %v73_v18 = vld [vmem:[#allocation3 + $0x20] sm:$0xff]  ;;  %v74_v19 = vld [vmem:[#allocation3 + $0x28] sm:$0xff]  ;;  %v78_v20 = vpack.c.bf16 %v72_v17, %v71_v16  ;;  %v75_v22 = vld [vmem:[#allocation3 + $0x30] sm:$0xff] }
  0x2e   :  { %476 = vmatprep.subr.bf16.mxu0 %v529_v2  ;;  %v79_v21 = vpack.c.bf16 %v74_v19, %v73_v18  ;;  %v76_v23 = vld [vmem:[#allocation3 + $0x38] sm:$0xff]  ;;  %v540_v25 = vld [vmem:[#allocation7 + $0x10] sm:$0xff]   ;;  %v541_v26 = vld [vmem:[#allocation7 + $0x8] sm:$0xff]  }
  0x2f   :  { %499 = vmatpush3.bf16.msra.mxu1 %v536_v9  ;;  %v80_v24 = vpack.c.bf16 %v76_v23, %v75_v22  ;;  %v542_v27 = vld [vmem:[#allocation7] sm:$0xff]  }
  0x30   :  { %500 = vmatprep.subr.bf16.mxu1 %v537_v11  ;;  %v429_v30 = vld [vmem:[%s709_s2] ss:$0 sm:$0xff] }
  0x31   :  { %477 = vmatpush3.bf16.msra.mxu0 %v529_v2  ;;  %v438_v57 = vld [vmem:[%s711_s4] ss:$0 sm:$0xff] }
  0x32   :  { %478 = vmatprep.subr.bf16.mxu0 %v530_v3  ;;  %v447_v61 = vld [vmem:[%s712_s5] ss:$0 sm:$0xff] }
  0x33   :  { %501 = vmatpush3.bf16.msra.mxu1 %v537_v11 }
  0x34   :  { %502 = vmatprep.subr.bf16.mxu1 %v538_v12 }
  0x35   :  { %479 = vmatpush3.bf16.msra.mxu0 %v530_v3 }
  0x36   :  { %480 = vmatprep.subr.bf16.mxu0 %v531_v7 }
  0x37   :  { %503 = vmatpush3.bf16.msra.mxu1 %v538_v12 }
  0x38   :  { %504 = vmatprep.subr.bf16.mxu1 %v539_v14 }
  0x39   :  { %481 = vmatpush3.bf16.msra.mxu0 %v531_v7 }
  0x3a   :  { %482 = vmatprep.subr.bf16.mxu0 %v532_v10 }
  0x3b   :  { %505 = vmatpush3.bf16.msra.mxu1 %v539_v14 }
  0x3c   :  { %506 = vmatprep.subr.bf16.mxu1 %v540_v25 }
  0x3d   :  { %483 = vmatpush3.bf16.msra.mxu0 %v532_v10 }
  0x3e   :  { %484 = vmatprep.subr.bf16.mxu0 %v533_v13 }
  0x3f   :  { %507 = vmatpush3.bf16.msra.mxu1 %v540_v25 }
  0x40   :  { %508 = vmatprep.subr.bf16.mxu1 %v541_v26 }
  0x41   :  { %485 = vmatpush3.bf16.msra.mxu0 %v533_v13 }
  0x42   :  { %486 = vmatprep.subr.bf16.mxu0 %v534_v15 }
  0x43   :  { %509 = vmatpush3.bf16.msra.mxu1 %v541_v26 }
  0x44   :  { %510 = vmatprep.subr.bf16.mxu1 %v542_v27 }
  0x45   :  { %487 = vmatpush3.bf16.msra.mxu0 %v534_v15 }
  0x47   :  { %511 = vmatpush3.bf16.msra.mxu1 %v542_v27  ;;  %v405_v27 = vstv %s713_s6 }
  0x48   :  { %489 = vmatmul.mubr.bf16.vlgmr.msra.gmra.mxu0 %v78_v20 }
  0x49   :  { %492 = vmatprep.mubr.bf16.mxu0 %v79_v21 }
  0x50   :  { %493 = vmatmul.mubr.bf16.gmra.mxu0 %v80_v24 }
 0x108   :  { %v490_v28 = vpop.f32.mrf.mxu0 }
 0x109   :  { %v195_v34 = vadd.f32 %v490_v28, %v429_v30 }
 0x10a   :  { %v186_v29 = vpop.f32.mrf.mxu0 }
 0x10b   :  { %v187_v32 = vadd.f32 %v429_v30, %v186_v29  ;;  %v219_v41 = vmax.f32 %v195_v34, 0.0 }
 0x10c   :  { %v491_v31 = vpop.f32.mrf.mxu0 }
 0x10d   :  { %v198_v33 = vadd.f32 %v491_v31, %v429_v30  ;;  %v217_v39 = vmax.f32 %v187_v32, 0.0 }
 0x10e   :  { %v189_v35 = vpop.f32.mrf.mxu0 }
 0x10f   :  { %v190_v36 = vadd.f32 %v429_v30, %v189_v35  ;;  %v220_v37 = vmax.f32 %v198_v33, 0.0 }
 0x110   :  { %v494_v38 = vpop.f32.mrf.mxu0 }
 0x111   :  { %v218_v40 = vmax.f32 %v190_v36, 0.0  ;;  %v226_v44 = vpack.c.bf16 %v220_v37, %v219_v41  ;;  %v211_v48 = vadd.f32 %v494_v38, %v429_v30 }
 0x112   :  { %v202_v42 = vpop.f32.mrf.mxu0 }
 0x113   :  { %v225_v43 = vpack.c.bf16 %v218_v40, %v217_v39  ;;  %v203_v46 = vadd.f32 %v429_v30, %v202_v42  ;;  %v223_v54 = vmax.f32 %v211_v48, 0.0 }
 0x114   :  { %v495_v45 = vpop.f32.mrf.mxu0 }
 0x115   :  { %v214_v47 = vadd.f32 %v495_v45, %v429_v30  ;;  %512 = vmatprep.mubr.bf16.mxu1 %v225_v43  ;;  %v221_v52 = vmax.f32 %v203_v46, 0.0 }
 0x116   :  { %v205_v49 = vpop.f32.mrf.mxu0  ;;  %513 = vmatmul.mubr.bf16.vlgmr.msra.gmra.mxu1 %v226_v44 }
 0x117   :  { %v206_v50 = vadd.f32 %v429_v30, %v205_v49  ;;  %v224_v51 = vmax.f32 %v214_v47, 0.0 }
 0x119   :  { %v222_v53 = vmax.f32 %v206_v50, 0.0  ;;  %v228_v56 = vpack.c.bf16 %v224_v51, %v223_v54 }
 0x11b   :  { %v227_v55 = vpack.c.bf16 %v222_v53, %v221_v52 }
 0x11d   :  { %516 = vmatprep.mubr.bf16.mxu1 %v227_v55 }
 0x11e   :  { %517 = vmatmul.mubr.bf16.gmra.mxu1 %v228_v56 }
 0x1d6   :  { %v514_v58 = vpop.f32.mrf.mxu1 }
 0x1d7   :  { %v343_v59 = vadd.f32 %v514_v58, %v438_v57 }
 0x1d8   :  { %v334_v60 = vpop.f32.mrf.mxu1 }
 0x1d9   :  { %v367_v62 = vmax.f32 %v343_v59, 0.0  ;;  %v335_v63 = vadd.f32 %v438_v57, %v334_v60 }
 0x1da   :  { %v515_v0 = vpop.f32.mrf.mxu1 }
 0x1db   :  { %v365_v1 = vmax.f32 %v335_v63, 0.0  ;;  %v346_v2 = vadd.f32 %v515_v0, %v438_v57  ;;  %v382_v3 = vmul.f32 %v447_v61, %v367_v62 }
 0x1dc   :  { %v337_v4 = vpop.f32.mrf.mxu1 }
 0x1dd   :  { %v368_v5 = vmax.f32 %v346_v2, 0.0  ;;  %v338_v6 = vadd.f32 %v438_v57, %v337_v4  ;;  %392 = vadd.xlane.f32.xlu1 %v382_v3  ;;  %v380_v7 = vmul.f32 %v447_v61, %v365_v1 }
 0x1de   :  { %v518_v8 = vpop.f32.mrf.mxu1 }
 0x1df   :  { %v366_v9 = vmax.f32 %v338_v6, 0.0  ;;  %388 = vadd.xlane.f32.xlu0 %v380_v7  ;;  %v383_v10 = vmul.f32 %v447_v61, %v368_v5  ;;  %v359_v12 = vadd.f32 %v518_v8, %v438_v57 }
 0x1e0   :  { %v350_v11 = vpop.f32.mrf.mxu1 }
 0x1e1   :  { %v351_v13 = vadd.f32 %v438_v57, %v350_v11  ;;  %394 = vadd.xlane.f32.xlu1 %v383_v10  ;;  %v381_v14 = vmul.f32 %v447_v61, %v366_v9  ;;  %v371_v18 = vmax.f32 %v359_v12, 0.0 }
 0x1e2   :  { %v519_v15 = vpop.f32.mrf.mxu1 }
 0x1e3   :  { %v369_v16 = vmax.f32 %v351_v13, 0.0  ;;  %390 = vadd.xlane.f32.xlu0 %v381_v14  ;;  %v362_v19 = vadd.f32 %v519_v15, %v438_v57  ;;  %v386_v25 = vmul.f32 %v447_v61, %v371_v18 }
 0x1e4   :  { %v353_v17 = vpop.f32.mrf.mxu1 }
 0x1e5   :  { %v354_v20 = vadd.f32 %v438_v57, %v353_v17  ;;  %v384_v21 = vmul.f32 %v447_v61, %v369_v16  ;;  %v372_v23 = vmax.f32 %v362_v19, 0.0 }
 0x1e7   :  { %v370_v22 = vmax.f32 %v354_v20, 0.0  ;;  %396 = vadd.xlane.f32.xlu0 %v384_v21  ;;  %v387_v26 = vmul.f32 %v447_v61, %v372_v23 }
 0x1e9   :  { %v385_v24 = vmul.f32 %v447_v61, %v370_v22 }
 0x1eb   :  { %398 = vadd.xlane.f32.xlu1 %v385_v24  ;;  %400 = vadd.xlane.f32.xlu0 %v386_v25 }
 0x1ef   :  { %402 = vadd.xlane.f32.xlu1 %v387_v26 }
 0x266   :  { %v393_v28 = vpop.xlane.xlu1 %392 }
 0x267   :  { %v408_v29 = vadd.f32 %v405_v27, %v393_v28 }
 0x268   :  { %v389_v30 = vpop.xlane.xlu0 %388 }
 0x269   :  { %417 = vst.msk [vmem:[%s714_s7 + $0x10] sm:$0xff] %vm414_vm0, %v408_v29  ;;  %v406_v31 = vadd.f32 %v405_v27, %v389_v30 }
 0x26a   :  { %v395_v32 = vpop.xlane.xlu1 %394 }
 0x26b   :  { %415 = vst.msk [vmem:[%s714_s7] sm:$0xff] %vm414_vm0, %v406_v31  ;;  %v409_v33 = vadd.f32 %v405_v27, %v395_v32 }
 0x26c   :  { %v391_v34 = vpop.xlane.xlu0 %390 }
 0x26d   :  { %418 = vst.msk [vmem:[%s714_s7 + $0x18] sm:$0xff] %vm414_vm0, %v409_v33  ;;  %v407_v35 = vadd.f32 %v405_v27, %v391_v34 }
 0x26f   :  { %416 = vst.msk [vmem:[%s714_s7 + $0x8] sm:$0xff] %vm414_vm0, %v407_v35 }
 0x270   :  { %v397_v36 = vpop.xlane.xlu0 %396 }
 0x271   :  { %v410_v37 = vadd.f32 %v405_v27, %v397_v36 }
 0x273   :  { %419 = vst.msk [vmem:[%s714_s7 + $0x20] sm:$0xff] %vm414_vm0, %v410_v37 }
 0x274   :  { %v399_v38 = vpop.xlane.xlu1 %398  ;;  %v401_v39 = vpop.xlane.xlu0 %400 }
 0x275   :  { %v411_v40 = vadd.f32 %v405_v27, %v399_v38  ;;  %v412_v41 = vadd.f32 %v405_v27, %v401_v39 }
 0x277   :  { %420 = vst.msk [vmem:[%s714_s7 + $0x28] sm:$0xff] %vm414_vm0, %v411_v40  ;;  %421 = vst.msk [vmem:[%s714_s7 + $0x30] sm:$0xff] %vm414_vm0, %v412_v41 }
 0x278   :  { %v403_v42 = vpop.xlane.xlu1 %402 }
 0x279   :  { %v413_v43 = vadd.f32 %v405_v27, %v403_v42 }
 0x27b   :  { %422 = vst.msk [vmem:[%s714_s7 + $0x38] sm:$0xff] %vm414_vm0, %v413_v43 }
 0x27c   :  { %427 = vsyncpa [#allocation4], 1 }
 0x27d   :  { %428 = vsyncpa [#allocation6], 1 }

</bundles_post_ra>
